<compile_context>
chip_gen: v6e
topology: v6e:2x2x1
jax: 0.10.0
libtpu: 0.0.40
codegen_flags: <defaults>
</compile_context>

<pallas_src>
import functools

import jax
import jax.numpy as jnp
import numpy as np
from jax.experimental import pallas as pl
from jax.experimental.pallas import tpu as pltpu


# ---------------------------------------------------------------------------
# Single-pass kernel: one grid step holds TB full (S, D) samples in VMEM.
# ---------------------------------------------------------------------------
def _collinear_zero_kernel(x_ref, o_ref, *, threshold, mxu_dtype):
    """x_ref / o_ref: (TB, S, D) VMEM tiles.

    For each sample the feature-feature correlation matrix is computed and
    every feature column j that is collinear (|corr[i, j]| > threshold for any
    i != j) with another feature is zeroed — exactly the advanced-indexing
    semantics of the PyTorch forward.
    """
    xf = x_ref[...].astype(jnp.float32)                    # (TB, S, D)

    # Center over the sequence axis.
    mean = jnp.mean(xf, axis=1, keepdims=True)             # (TB, 1, D)
    xc = xf - mean

    # Fold the 1/(S-1) covariance scale into the normalization: correlation is
    # scale invariant, so normalizing by the raw sum of squares cancels the
    # (S-1) factors exactly (and removes the S == 1 division-by-zero hazard).
    sumsq = jnp.sum(xc * xc, axis=1, keepdims=True)        # (TB, 1, D)
    # Zero-variance features: the torch reference yields NaN correlations which
    # never exceed the threshold; we map them to corr == 0 instead, equivalent
    # for any threshold >= 0 (the module default is 0.5).
    inv_norm = jnp.where(sumsq > 0.0, jax.lax.rsqrt(sumsq), 0.0)   # EUP slot
    xn = xc * inv_norm                                     # (TB, S, D)

    # Reduced-precision MXU inputs (valid on v5e/v6e/v7x); f32 accumulation.
    xn_m = xn if mxu_dtype is None else xn.astype(mxu_dtype)

    # Correlation matrix straight off the MXU: contract the S axis, no
    # transpose materialization, no post-scale.
    corr = jnp.einsum("bsd,bse->bde", xn_m, xn_m,
                      preferred_element_type=jnp.float32)  # (TB, D, D)

    d = corr.shape[-1]
    row = jax.lax.broadcasted_iota(jnp.int32, (d, d), 0)
    col = jax.lax.broadcasted_iota(jnp.int32, (d, d), 1)
    off_diag = (row != col)[None]                          # (1, D, D)

    # Fused select + sublane max-reduce + one compare (no (TB,D,D) bool mask).
    colmax = jnp.max(jnp.where(off_diag, jnp.abs(corr), 0.0),
                     axis=1, keepdims=True)                # (TB, 1, D)
    zero_col = colmax > threshold

    # Re-read the tile from VMEM at store time; the original-dtype copy is not
    # kept live across the whole kernel.
    o_ref[...] = jnp.where(zero_col, 0.0, x_ref[...]).astype(o_ref.dtype)


# ---------------------------------------------------------------------------
# Long-S path, pass 1: accumulate Gram / sum / sum-of-squares over S chunks,
# emit the per-feature zero mask at the last chunk.
# ---------------------------------------------------------------------------
def _stats_kernel(x_ref, zcol_ref, gram_ref, sum_ref, sq_ref, *,
                  threshold, seq_len, chunk, mxu_dtype):
    s = pl.program_id(1)

    @pl.when(s == 0)
    def _init():
        gram_ref[...] = jnp.zeros_like(gram_ref)
        sum_ref[...] = jnp.zeros_like(sum_ref)
        sq_ref[...] = jnp.zeros_like(sq_ref)

    xf = x_ref[...].astype(jnp.float32)                    # (1, chunk, D)
    # Mask rows past the true sequence length (tail chunk padding).
    ridx = s * chunk + jax.lax.broadcasted_iota(jnp.int32, xf.shape, 1)
    xf = jnp.where(ridx < seq_len, xf, 0.0)

    xm = xf if mxu_dtype is None else xf.astype(mxu_dtype)
    gram_ref[...] += jnp.einsum("bsd,bse->bde", xm, xm,
                                preferred_element_type=jnp.float32)
    sum_ref[...] += jnp.sum(xf, axis=1, keepdims=True)
    sq_ref[...] += jnp.sum(xf * xf, axis=1, keepdims=True)

    @pl.when(s == pl.num_programs(1) - 1)
    def _finalize():
        inv_n = 1.0 / seq_len
        ssum = sum_ref[...]                                # (1, 1, D)
        ssum_t = jnp.transpose(ssum, (0, 2, 1))            # (1, D, 1)
        # (S-1)*cov and (S-1)*var: the (S-1) factors cancel in the correlation.
        cov_s = gram_ref[...] - (ssum_t * ssum) * inv_n    # (1, D, D)
        var_s = sq_ref[...] - (ssum * ssum) * inv_n        # (1, 1, D)
        inv = jnp.where(var_s > 0.0, jax.lax.rsqrt(var_s), 0.0)
        inv_t = jnp.transpose(inv, (0, 2, 1))              # (1, D, 1)
        corr = cov_s * inv * inv_t                         # (1, D, D)

        d = corr.shape[-1]
        row = jax.lax.broadcasted_iota(jnp.int32, (d, d), 0)
        col = jax.lax.broadcasted_iota(jnp.int32, (d, d), 1)
        off_diag = (row != col)[None]
        colmax = jnp.max(jnp.where(off_diag, jnp.abs(corr), 0.0),
                         axis=1, keepdims=True)            # (1, 1, D)
        zcol_ref[...] = (colmax > threshold).astype(jnp.float32)


# ---------------------------------------------------------------------------
# Long-S path, pass 2: apply the per-feature zero mask chunk by chunk.
# ---------------------------------------------------------------------------
def _apply_kernel(zcol_ref, x_ref, o_ref):
    o_ref[...] = jnp.where(zcol_ref[...] > 0.5, 0.0,
                           x_ref[...]).astype(o_ref.dtype)


# ---------------------------------------------------------------------------
# Wrapper
# ---------------------------------------------------------------------------
def _vmem_budget():
    """Generation-aware VMEM limit + per-step tile budget."""
    try:
        vmem_cap = pltpu.get_tpu_info().vmem_capacity_bytes
    except Exception:
        vmem_cap = 64 << 20  # conservative: v7x per-TensorCore VMEM
    # Leave headroom for Mosaic internal scratch and double-buffered IO tiles:
    # v7x (64 MiB) -> 48 MiB limit / ~12 MiB tile budget;
    # v5e/v6e (128 MiB) -> 100 MiB limit / ~25 MiB tile budget.
    vmem_limit = int(min(max(vmem_cap - (16 << 20), 32 << 20), 100 << 20))
    tile_budget = max(vmem_limit // 4, 8 << 20)
    return vmem_limit, tile_budget


def collinear_activation(x, threshold=0.5, mxu_dtype=jnp.bfloat16,
                         max_tile_bytes=None):
    """Pallas implementation of the PyTorch `activation` forward.

    x: (B, S, D).  `mxu_dtype=jnp.bfloat16` (default) feeds the MXU in bf16
    with f32 accumulation — a throughput/VMEM knob on all of v5e/v6e/v7x, but
    note it can flip the zero/keep decision for correlations that sit within
    bf16 rounding of `threshold`; pass `mxu_dtype=jnp.float32` (or None) for
    exact parity with the f32 reference.
    """
    B, S, D = x.shape
    vmem_limit, tile_budget = _vmem_budget()
    if max_tile_bytes is not None:
        tile_budget = max_tile_bytes

    itemsize = jnp.dtype(x.dtype).itemsize
    mxu_itemsize = 4 if mxu_dtype is None else jnp.dtype(mxu_dtype).itemsize

    # Per-sample VMEM working set of the single-pass kernel: double-buffered
    # in/out tiles + f32 intermediates (xc, xn) + MXU-input copy + corr.
    per_sample = (4 * S * D * itemsize
                  + 2 * S * D * 4
                  + S * D * mxu_itemsize
                  + D * D * 4)

    if per_sample <= tile_budget or S < 16:
        # ----------------------- single-pass path --------------------------
        # TODO(synk): very large D with tiny S (the D x D correlation matrix
        # alone exceeding the VMEM budget) would need a D-tiled correlation
        # pass; not implemented.
        min_steps = min(B, 4)   # keep several grid steps so BlockSpec
                                # pipelining overlaps DMA/compute and both
                                # v7x TensorCores get work.
        max_tb = max(1, min(B // min_steps, tile_budget // per_sample))
        tb = 1
        for cand in range(int(max_tb), 0, -1):
            if B % cand == 0:
                tb = cand
                break

        kernel = functools.partial(_collinear_zero_kernel,
                                   threshold=threshold, mxu_dtype=mxu_dtype)
        return pl.pallas_call(
            kernel,
            out_shape=jax.ShapeDtypeStruct((B, S, D), x.dtype),
            grid=(B // tb,),
            in_specs=[pl.BlockSpec((tb, S, D), lambda b: (b, 0, 0))],
            out_specs=pl.BlockSpec((tb, S, D), lambda b: (b, 0, 0)),
            compiler_params=pltpu.CompilerParams(
                dimension_semantics=("parallel",),
                vmem_limit_bytes=vmem_limit,
            ),
        )(x)

    # ------------------------- chunked (long-S) path ------------------------
    # Two pipelined passes over S chunks: (1) accumulate Gram / sum / sumsq
    # into VMEM scratch and emit the zero-column mask; (2) apply the mask.
    row_bytes = D * (4 * itemsize + 4 + mxu_itemsize)
    ts = max(8, ((tile_budget - D * D * 4) // row_bytes) // 8 * 8)
    ts = min(ts, S)
    n_chunks = pl.cdiv(S, ts)

    stats = functools.partial(_stats_kernel, threshold=threshold, seq_len=S,
                              chunk=ts, mxu_dtype=mxu_dtype)
    zero_col = pl.pallas_call(
        stats,
        out_shape=jax.ShapeDtypeStruct((B, 1, D), jnp.float32),
        grid=(B, n_chunks),
        in_specs=[pl.BlockSpec((1, ts, D), lambda b, s: (b, s, 0))],
        out_specs=pl.BlockSpec((1, 1, D), lambda b, s: (b, 0, 0)),
        scratch_shapes=[pltpu.VMEM((1, D, D), jnp.float32),
                        pltpu.VMEM((1, 1, D), jnp.float32),
                        pltpu.VMEM((1, 1, D), jnp.float32)],
        compiler_params=pltpu.CompilerParams(
            dimension_semantics=("parallel", "arbitrary"),
            vmem_limit_bytes=vmem_limit,
        ),
    )(x)

    return pl.pallas_call(
        _apply_kernel,
        out_shape=jax.ShapeDtypeStruct((B, S, D), x.dtype),
        grid=(B, n_chunks),
        in_specs=[pl.BlockSpec((1, 1, D), lambda b, s: (b, 0, 0)),
                  pl.BlockSpec((1, ts, D), lambda b, s: (b, s, 0))],
        out_specs=pl.BlockSpec((1, ts, D), lambda b, s: (b, s, 0)),
        compiler_params=pltpu.CompilerParams(
            dimension_semantics=("parallel", "parallel"),
            vmem_limit_bytes=vmem_limit,
        ),
    )(zero_col, x)


# ---------------------------------------------------------------------------
# Pure-JAX reference mirroring the PyTorch forward.
# ---------------------------------------------------------------------------
def _reference(x, threshold=0.5):
    B, S, D = x.shape
    mean = jnp.mean(x, axis=1, keepdims=True)
    xc = x - mean
    cov = jnp.einsum("bsd,bse->bde", xc, xc) / (S - 1)
    std = jnp.sqrt(jnp.diagonal(cov, axis1=1, axis2=2))           # (B, D)
    corr = cov / (std[:, :, None] * std[:, None, :])
    eye = jnp.eye(D, dtype=bool)[None]
    mask = jnp.logical_and(jnp.abs(corr) > threshold, ~eye)
    zero_col = jnp.any(mask, axis=1)                              # (B, D)
    return jnp.where(zero_col[:, None, :], 0.0, x)


if __name__ == "__main__":
    key = jax.random.PRNGKey(0)
    k1, k2 = jax.random.split(key)

    # Single-pass path (f32 MXU inputs for exact parity with the reference).
    B, S, D = 2, 8, 32
    x1 = jax.random.normal(k1, (B, S, D), dtype=jnp.float32)
    out1 = jax.block_until_ready(
        collinear_activation(x1, threshold=0.5, mxu_dtype=jnp.float32))
    ref1 = jax.block_until_ready(_reference(x1, threshold=0.5))
    np.testing.assert_allclose(np.asarray(out1), np.asarray(ref1),
                               rtol=1e-5, atol=1e-5)

    # Chunked long-S path (forced via a tiny tile budget), f32 for parity.
    x2 = jax.random.normal(k2, (2, 16, 32), dtype=jnp.float32)
    out2 = jax.block_until_ready(
        collinear_activation(x2, threshold=0.5, mxu_dtype=jnp.float32,
                             max_tile_bytes=1))
    ref2 = jax.block_until_ready(_reference(x2, threshold=0.5))
    np.testing.assert_allclose(np.asarray(out2), np.asarray(ref2),
                               rtol=1e-5, atol=1e-5)

    # Default (bf16 MXU inputs) smoke run — semantics may differ only for
    # correlations within bf16 rounding of the threshold.
    out3 = jax.block_until_ready(collinear_activation(x1, threshold=0.5))
    assert out3.shape == x1.shape and out3.dtype == x1.dtype

    print("KERNEL_OK")
</pallas_src>

<mosaic_0001>
module attributes {stable_mosaic.version = 11 : i64} {
  func.func @_collinear_zero_kernel(%arg0: i32, %arg1: memref<1x8x32xf32, #tpu.memory_space<vmem>>, %arg2: memref<1x8x32xf32, #tpu.memory_space<vmem>>) attributes {dimension_semantics = [#tpu.dimension_semantics<parallel>], iteration_bounds = array<i64: 2>, scalar_prefetch = 0 : i64, scratch_operands = 0 : i64, tpu.core_type = #tpu.core_type<tc>, window_params = [{transform_indices = @transform_0, window_bounds = array<i64: 1, 8, 32>}, {transform_indices = @transform_1, window_bounds = array<i64: 1, 8, 32>}]} {
    %c0 = arith.constant 0 : index
    %c0_0 = arith.constant 0 : index
    %c0_1 = arith.constant 0 : index
    %0 = vector.load %arg1[%c0, %c0_0, %c0_1] : memref<1x8x32xf32, #tpu.memory_space<vmem>>, vector<1x8x32xf32>
    %cst = arith.constant dense<0.000000e+00> : vector<1x32xf32>
    %1 = vector.multi_reduction <add>, %0, %cst [1] : vector<1x8x32xf32> to vector<1x32xf32>
    %2 = vector.shape_cast %1 : vector<1x32xf32> to vector<1x1x32xf32>
    %cst_2 = arith.constant 8.000000e+00 : f32
    %3 = vector.broadcast %cst_2 : f32 to vector<1x1x32xf32>
    %4 = arith.divf %2, %3 : vector<1x1x32xf32>
    %5 = vector.broadcast %4 : vector<1x1x32xf32> to vector<1x8x32xf32>
    %6 = arith.subf %0, %5 : vector<1x8x32xf32>
    %7 = arith.mulf %6, %6 : vector<1x8x32xf32>
    %cst_3 = arith.constant dense<0.000000e+00> : vector<1x32xf32>
    %8 = vector.multi_reduction <add>, %7, %cst_3 [1] : vector<1x8x32xf32> to vector<1x32xf32>
    %9 = vector.shape_cast %8 : vector<1x32xf32> to vector<1x1x32xf32>
    %cst_4 = arith.constant 0.000000e+00 : f32
    %10 = vector.broadcast %cst_4 : f32 to vector<1x1x32xf32>
    %11 = arith.cmpf ogt, %9, %10 : vector<1x1x32xf32>
    %12 = math.rsqrt %9 : vector<1x1x32xf32>
    %cst_5 = arith.constant 0.000000e+00 : f32
    %13 = vector.broadcast %cst_5 : f32 to vector<1x1x32xf32>
    %14 = arith.select %11, %12, %13 : vector<1x1x32xi1>, vector<1x1x32xf32>
    %15 = vector.broadcast %14 : vector<1x1x32xf32> to vector<1x8x32xf32>
    %16 = arith.mulf %6, %15 : vector<1x8x32xf32>
    "tpu.trace_start"() <{level = 10 : i32, message = "bsd,bse->bde"}> : () -> ()
    %cst_6 = arith.constant dense<0.000000e+00> : vector<1x32x32xf32>
    %17 = tpu.matmul %16, %16, %cst_6 {dimension_numbers = #tpu.dot_dimension_numbers<[1], [1], [2], [2], [0, 0, 0, 2, 1, 2], [0], [0]>} : vector<1x8x32xf32>, vector<1x8x32xf32>, vector<1x32x32xf32> -> vector<1x32x32xf32>
    "tpu.trace_stop"() : () -> ()
    %18 = tpu.iota {dimensions = array<i32: 0>} : vector<32x32xi32>
    %19 = tpu.iota {dimensions = array<i32: 1>} : vector<32x32xi32>
    %20 = arith.cmpi ne, %18, %19 : vector<32x32xi32>
    %21 = vector.shape_cast %20 : vector<32x32xi1> to vector<1x32x32xi1>
    %22 = math.absf %17 : vector<1x32x32xf32>
    %cst_7 = arith.constant 0.000000e+00 : f32
    %23 = vector.broadcast %cst_7 : f32 to vector<1x32x32xf32>
    %24 = arith.select %21, %22, %23 : vector<1x32x32xi1>, vector<1x32x32xf32>
    %cst_8 = arith.constant dense<0xFF800000> : vector<1x32xf32>
    %25 = vector.multi_reduction <maximumf>, %24, %cst_8 [1] : vector<1x32x32xf32> to vector<1x32xf32>
    %26 = vector.shape_cast %25 : vector<1x32xf32> to vector<1x1x32xf32>
    %cst_9 = arith.constant 5.000000e-01 : f32
    %27 = vector.broadcast %cst_9 : f32 to vector<1x1x32xf32>
    %28 = arith.cmpf ogt, %26, %27 : vector<1x1x32xf32>
    %c0_10 = arith.constant 0 : index
    %c0_11 = arith.constant 0 : index
    %c0_12 = arith.constant 0 : index
    %29 = vector.load %arg1[%c0_10, %c0_11, %c0_12] : memref<1x8x32xf32, #tpu.memory_space<vmem>>, vector<1x8x32xf32>
    %cst_13 = arith.constant 0.000000e+00 : f32
    %30 = vector.shape_cast %28 : vector<1x1x32xi1> to vector<1x1x32xi1>
    %31 = vector.broadcast %30 : vector<1x1x32xi1> to vector<1x8x32xi1>
    %32 = vector.broadcast %cst_13 : f32 to vector<1x8x32xf32>
    %33 = arith.select %31, %32, %29 : vector<1x8x32xi1>, vector<1x8x32xf32>
    %c0_14 = arith.constant 0 : index
    %c0_15 = arith.constant 0 : index
    %c0_16 = arith.constant 0 : index
    %34 = vector.load %arg2[%c0_14, %c0_15, %c0_16] : memref<1x8x32xf32, #tpu.memory_space<vmem>>, vector<1x8x32xf32>
    tpu.vector_store %arg2[%c0_14, %c0_15, %c0_16], %33 {strides = array<i32>} : memref<1x8x32xf32, #tpu.memory_space<vmem>>, vector<1x8x32xf32>,
    return
  }
  func.func @transform_0(%arg0: i32) -> (i32, i32, i32) {
    %c0_i32 = arith.constant 0 : i32
    %c0_i32_0 = arith.constant 0 : i32
    %c0_i32_1 = arith.constant 0 : i32
    return %arg0, %c0_i32, %c0_i32_0 : i32, i32, i32
  }
  func.func @transform_1(%arg0: i32) -> (i32, i32, i32) {
    %c0_i32 = arith.constant 0 : i32
    %c0_i32_0 = arith.constant 0 : i32
    %c0_i32_1 = arith.constant 0 : i32
    return %arg0, %c0_i32, %c0_i32_0 : i32, i32, i32
  }
}

</mosaic_0001>

<bundles_post_ra>
// kernel: tpu_custom_call.1
= control target key start
LH: loop header
LB: loop body
LE: loop exit
PB: predicated region body
PF: predicated region fallthrough
CT: control target
= control target key end

     0   :  { %6 = vsyncpa [#allocation3], 0  ;;  %s757_s0 = inlined_call_operand.hbm [shape: f32[2,8,32], index: 0, kind: input, shape index: {}]   ;;  %s758_s1 = inlined_call_operand.hbm [shape: f32[2,8,32], index: 1, kind: output, shape index: {}]  }
   0x1   :  { %8 = vsyncpa [#allocation3 + $0x1], 0 }
   0x2   :  { %9 = vsyncpa [#allocation4], 0 }
   0x3   :  { %11 = vsyncpa [#allocation4 + $0x1], 0  ;;  %s594_s6 = smov 0   ;;  %s596_s7 = smov 0  }
   0x4   :  { %s598_s8 = smov 0   ;;  %s600_s9 = smov 0  }
   0x5 LB: > { %s615_s10 = sadd.s32 4294967295, %s580_s9   ;;  %s408_s11 = sadd.s32 4294967294, %s580_s9   ;;  %s580_s9 = sphi %s600_s9, %s775_s9   ;;  %s576_s8 = sphi %s598_s8, %s774_s8   ;;  %s572_s7 = sphi %s596_s7, %s773_s7   ;;  %s568_s6 = sphi %s594_s6, %s772_s6  }
   0x6   : > { %s619_s12 = sadd.s32 1, %s580_s9   ;;  %s24_s13 = sadd.s32 1, %s576_s8 }
   0x7   : > { %s21_s14 = ssub.s32 %s580_s9, %s619_s12  ;;  %p31_p0 = scmp.ne.s32.totalorder %s576_s8, %s572_s7 }
   0x8   : > { %p22_p1 = scmp.eq.s32.totalorder %s21_s14, 0  ;;  %p32_p2 = scmp.eq.s32.totalorder %s580_s9, 0 }
   0x9   : > { %p37_p3 = scmp.ne.s32.totalorder %s572_s7, %s568_s6  ;;  %p38_p4 = scmp.eq.s32.totalorder %s615_s10, 0 }
   0xa   : > { %s631_s15 = scalar_select %p22_p1, %s576_s8, %s24_s13  }
   0xb   : > { %p633_p5 = por %p32_p2, %p31_p0  ;;  %p637_p6 = por %p38_p4, %p37_p3 }
   0xc   : > { %p61_p7 = scmp.eq.s32.totalorder %s615_s10, 1  ;;  %p67_p8 = scmp.eq.s32.totalorder %s408_s11, 1 }
   0xd   : > { %s762_s17 = scalar_select %p637_p6, 1, 0 }
   0xe   : > { %p451_p10 = scmp.lt.s32.totalorder %s580_s9, 2  ;;  %p644_p11 = por %p61_p7, %p31_p0 }
   0xf   : > { %p648_p12 = por %p67_p8, %p37_p3  ;;  %s87_s20 = sand.u32 1, %s576_s8  }
  0x10   : > { %s763_s18 = scalar_select %p644_p11, 1, 0 }
  0x11   : > { %s764_s19 = scalar_select %p648_p12, 1, 0 }
  0x12   : > { %s412_s21 = sshll.u32 %s580_s9, 7  ;;  %s411_s22 = sshll.u32 %s87_s20, 3 }
  0x13   : > { %s657_s25 = scalar_lea.hbm %s757_s0, %s412_s21  ;;  %s91_s26 = scalar_lea.vmem [#allocation2], %s411_s22 }
  0x14   : > { %s98_s27 = sshll.u32 %s91_s26, 4  ;;  %p661_p13 = pnand %p451_p10, %p633_p5  ;;  %s665_s27 = int_to_ptr.vmem [resolvable:$true] %s98_s27 }
  0x15   : > { %s88_s29 = scalar_lea.sflag [#allocation3], %s87_s20  ;;  %s488_s30 = scalar_lea.hbm %s657_s25, 128 }
  0x16   : > { %p489_p2 = scmp.ne.s32.totalorder %s657_s25, %s488_s30  ;;  %p490_p3 = pneg %p661_p13 }
  0x17   : > { %s493_s4 = scalar_lea.hbm %s757_s0, 256  ;;  %p494_p5 = scmp.lt.s32.totalorder %s657_s25, %s757_s0 }
  0x18   : > { %p491_p4 = pnand %p490_p3, %p489_p2  ;;  %p495_p8 = scmp.lt.s32.totalorder %s493_s4, %s488_s30 }
  0x1a   : > { %p492_p7 = pneg %p491_p4  ;;  %p496_p10 = por %p495_p8, %p494_p5 }
  0x1c   : > { %p497_p9 = pnand %p496_p10, %p492_p7 }
  0x1e   : > { %500 = shalt.err (!%p497_p9)
}
  0x1f   : > { %s501_s13 = scalar_lea.vmem %s665_s27, 128  ;;  %s582_s14 = smov [#allocation2]  }
  0x20   : > { %p502_p0 = scmp.ne.s32.totalorder %s665_s27, %s501_s13  ;;  %s506_s16 = sshll.u32 %s582_s14, 4  ;;  %s507_s16 = int_to_ptr.vmem [resolvable:$false] %s506_s16 }
  0x21   : > { %s508_s20 = scalar_lea.vmem %s507_s16, 256  ;;  %p509_p4 = scmp.lt.s32.totalorder %s665_s27, %s507_s16 }
  0x22   : > { %p504_p1 = pnand %p502_p0, %p490_p3  ;;  %p510_p12 = scmp.lt.s32.totalorder %s508_s20, %s501_s13 }
  0x24   : > { %p505_p2 = pneg %p504_p1  ;;  %p511_p11 = por %p510_p12, %p509_p4 }
  0x26   : > { %p512_p6 = pnand %p511_p11, %p505_p2 }
  0x28   : > { %515 = shalt.err (!%p512_p6)
}
  0x29   : > { %446 = dma.hbm_to_vmem [thread:$0]  (!%p661_p13), %s657_s25, 128, %s665_s27, %s88_s29  }
  0x2a   : > { %p766_p9 = scmp.lt.s32.totalorder %s580_s9, 3  ;;  %p767_p7 = scmp.ge.s32.totalorder %s580_s9, 1 }
  0x2c   : > { %p104_p0 = pnand %p767_p7, %p766_p9 }
  0x2d   : > { %s692_s21 = sand.u32 (!%p104_p0), 1, %s572_s7   ;;  %p768_p6 = scmp.ne.s32.totalorder (!%p104_p0), %s762_s17, 0 }
  0x2e   : > { %107 = sbr.rel (%p104_p0) target bundleno = 469 (0x1d5), region = 24  ;;  %s414_s22 = sshll.u32 (!%p104_p0), %s692_s21, 3 }
  0x2f   : > { %s110_s23 = scalar_lea.sflag (!%p104_p0), [#allocation3], %s692_s21  ;;  %s113_s24 = scalar_lea.vmem (!%p104_p0), [#allocation2], %s414_s22 }
  0x33   : > { %559 = dma.done.wait (%p768_p6), %s110_s23, 128  }
  0x34   : > { %561 = vsyncadd (%p768_p6), %s110_s23, 4294967168  ;;  %vm133_vm0 = vcmask 261120   ;;  %v702_v0 = vld [vmem:[%s113_s24] sm:$0xff]  ;;  %vm188_vm2 = vcmask 64512   ;;  %v286_v25 = vlaneseq  ;;  %s421_s17 = sshll.u32 %s615_s10, 7  ;;  %s131_s25 = scalar_lea.vmem [#allocation5], %s414_s22 }
  0x35   : > { %v134_v1 = vsel %vm133_vm0, %v702_v0, 0.0  ;;  %s338_s26 = sshll.u32 %s131_s25, 4  ;;  %s718_s29 = scalar_lea.hbm %s758_s1, %s421_s17  ;;  %s339_s26 = int_to_ptr.vmem [resolvable:$true] %s338_s26 }
  0x36   : > { %v135_v2 = vrot.slane %v134_v1, 4  ;;  %v287_v27 = vshrl.u32 %v286_v25, 7  ;;  %v292_v30 = vand.u32 127, %v286_v25  ;;  %s325_s30 = scalar_lea.sflag [#allocation4], %s692_s21  ;;  %s516_s2 = scalar_lea.vmem %s339_s26, 128 }
  0x37   : > { %p517_p11 = scmp.ne.s32.totalorder %s339_s26, %s516_s2  ;;  %p769_p12 = scmp.ne.s32.totalorder %s763_s18, 0 }
  0x38   : > { %v136_v3 = vadd.f32 %v135_v2, %v134_v1  ;;  %v288_v29 = vadd.s32 8, %v287_v27  ;;  %v290_v31 = vadd.s32 24, %v287_v27  ;;  %vm293_vm3 = vcmp.ne.s32.totalorder %v287_v27, %v292_v30  ;;  %s583_s10 = smov [#allocation5]  }
  0x39   : > { %v289_v33 = vadd.s32 16, %v287_v27  ;;  %p518_p13 = pnand %p517_p11, %p769_p12  ;;  %s520_s3 = sshll.u32 %s583_s10, 4  ;;  %s521_s3 = int_to_ptr.vmem [resolvable:$false] %s520_s3 }
  0x3a   : > { %v137_v4 = vrot.slane %v136_v3, 2  ;;  %vm294_vm4 = vcmp.ne.s32.totalorder %v288_v29, %v292_v30  ;;  %vm296_vm5 = vcmp.ne.s32.totalorder %v290_v31, %v292_v30  ;;  %s522_s4 = scalar_lea.vmem %s521_s3, 256  ;;  %p523_p3 = scmp.lt.s32.totalorder %s339_s26, %s521_s3 }
  0x3b   : > { %vm295_vm6 = vcmp.ne.s32.totalorder %v289_v33, %v292_v30  ;;  %p519_p1 = pneg %p518_p13  ;;  %p524_p5 = scmp.lt.s32.totalorder %s522_s4, %s516_s2 }
  0x3c   : > { %v138_v5 = vadd.f32 %v137_v4, %v136_v3 }
  0x3d   : > { %p525_p8 = por %p524_p5, %p523_p3 }
  0x3e   : > { %v139_v6 = vrot.slane %v138_v5, 1 }
  0x3f   : > { %p526_p10 = pnand %p525_p8, %p519_p1 }
  0x40   : > { %v140_v7 = vadd.f32 %v139_v6, %v138_v5 }
  0x42   : > { %v142_v8 = vmul.f32 0.125, %v140_v7 }
  0x44   : > { %v143_v9 = vsub.f32 %v702_v0, %v142_v8 }
  0x46   : > { %v144_v10 = vmul.f32 %v143_v9, %v143_v9 }
  0x48   : > { %v145_v11 = vsel %vm133_vm0, %v144_v10, 0.0 }
  0x49   : > { %v146_v12 = vrot.slane %v145_v11, 4 }
  0x4b   : > { %v147_v13 = vadd.f32 %v146_v12, %v145_v11 }
  0x4d   : > { %v148_v14 = vrot.slane %v147_v13, 2 }
  0x4f   : > { %v149_v15 = vadd.f32 %v148_v14, %v147_v13 }
  0x51   : > { %v150_v16 = vrot.slane %v149_v15, 1 }
  0x53   : > { %v151_v17 = vadd.f32 %v150_v16, %v149_v15 }
  0x55   : > { %486 = vrsqrt.f32 %v151_v17  ;;  %vm152_vm1 = vcmp.gt.f32.partialorder %v151_v17, 0.0 }
  0x62   : > { %v487_v18 = vpop.eup %486 }
  0x63   : > { %v154_v19 = vsel %vm152_vm1, %v487_v18, 0.0 }
  0x64   : > { %v155_v20 = vmul.f32 %v154_v19, %v143_v9 }
  0x66   : > { %156 = vxpose.xlu0.b32.start.end [1/1] (short) (narrow) %v155_v20, 32  ;;  %429 = vmatprep.subr.mxu0 %v155_v20 }
  0x67   : > { %430 = vmatpush3.msra.mxu0 %v155_v20  ;;  %437 = vmatprep.subr.mxu1 %v155_v20 }
  0x68   : > { %438 = vmatpush3.msra.mxu1 %v155_v20 }
  0xe2   : > { %v172_v21 = vpop.trf.xlu0 }
  0xe3   : > { %431 = vmatprep.mubr.msk.f32.mxu0 %vm188_vm2, %v172_v21 }
  0xe6   : > { %v173_v22 = vpop.trf.xlu0 }
  0xe7   : > { %432 = vmatmul.mubr.msk.f32.vlgmr.msra.gmra.mxu0 %vm188_vm2, %v173_v22 }
  0xea   : > { %v174_v23 = vpop.trf.xlu0 }
  0xeb   : > { %434 = vmatprep.mubr.msk.f32.mxu1 %vm188_vm2, %v174_v23 }
  0xee   : > { %v175_v24 = vpop.trf.xlu0 }
  0xef   : > { %435 = vmatmul.mubr.msk.f32.vlgmr.msra.gmra.mxu1 %vm188_vm2, %v175_v24 }
 0x1a7   : > { %v433_v26 = vpop.f32.mrf.mxu0 }
 0x1a8   : > { %v298_v34 = vand.u32 2147483647, %v433_v26 }
 0x1a9   : > { %v267_v28 = vpop.f32.mrf.mxu0 }
 0x1aa   : > { %v297_v32 = vand.u32 2147483647, %v267_v28  ;;  %v302_v39 = vsel %vm294_vm4, %v298_v34, 0.0 }
 0x1ab   : > { %v306_v44 = vsel %vm133_vm0, %v302_v39, -inf }
 0x1ac   : > { %v301_v36 = vsel %vm293_vm3, %v297_v32, 0.0 }
 0x1ad   : > { %v305_v42 = vsel %vm133_vm0, %v301_v36, -inf }
 0x1ae   : > { %v309_v47 = vmax.f32 %v305_v42, %v306_v44 }
 0x1af   : > { %v436_v35 = vpop.f32.mrf.mxu1 }
 0x1b0   : > { %v300_v37 = vand.u32 2147483647, %v436_v35 }
 0x1b1   : > { %v277_v38 = vpop.f32.mrf.mxu1 }
 0x1b2   : > { %v304_v40 = vsel %vm296_vm5, %v300_v37, 0.0  ;;  %v299_v41 = vand.u32 2147483647, %v277_v38 }
 0x1b3   : > { %v308_v45 = vsel %vm133_vm0, %v304_v40, -inf }
 0x1b4   : > { %v303_v43 = vsel %vm295_vm6, %v299_v41, 0.0 }
 0x1b5   : > { %v307_v46 = vsel %vm133_vm0, %v303_v43, -inf }
 0x1b6   : > { %v310_v48 = vmax.f32 %v307_v46, %v308_v45 }
 0x1b8   : > { %v311_v49 = vmax.f32 %v309_v47, %v310_v48 }
 0x1ba   : > { %v312_v50 = vrot.slane %v311_v49, 4 }
 0x1bc   : > { %v313_v51 = vmax.f32 %v311_v49, %v312_v50 }
 0x1be   : > { %v314_v52 = vrot.slane %v313_v51, 2 }
 0x1c0   : > { %v315_v53 = vmax.f32 %v313_v51, %v314_v52 }
 0x1c2   : > { %v316_v54 = vrot.slane %v315_v53, 1 }
 0x1c4   : > { %v317_v55 = vmax.f32 %v315_v53, %v316_v54 }
 0x1c6   : > { %vm318_vm7 = vcmp.gt.f32.partialorder %v317_v55, 0.5 }
 0x1c7   : > { %v322_v56 = vsel %vm318_vm7, 0.0, %v702_v0 }
 0x1c8   : > { %323 = vst.msk [vmem:[%s131_s25] sm:$0xff] %vm133_vm0, %v322_v56 }
 0x1c9   : > { %529 = shalt.err (!%p526_p10)
}
 0x1ca   : > { %s530_s5 = scalar_lea.hbm %s718_s29, 128  ;;  %s534_s14 = scalar_lea.hbm %s758_s1, 256 }
 0x1cb   : > { %p531_p2 = scmp.ne.s32.totalorder %s718_s29, %s530_s5  ;;  %p535_p7 = scmp.lt.s32.totalorder %s718_s29, %s758_s1 }
 0x1cc   : > { %p536_p0 = scmp.lt.s32.totalorder %s534_s14, %s530_s5 }
 0x1cd   : > { %p532_p4 = pnand %p531_p2, %p769_p12 }
 0x1ce   : > { %p537_p6 = por %p536_p0, %p535_p7 }
 0x1cf   : > { %p533_p9 = pneg %p532_p4 }
 0x1d1   : > { %p538_p11 = pnand %p537_p6, %p533_p9 }
 0x1d3   : > { %541 = shalt.err (!%p538_p11)
}
 0x1d4   : > { %441 = dma.vmem_to_hbm [thread:$0]  (%p769_p12), %s339_s26, 128, %s718_s29, %s325_s30  }
 0x1d5 PF: > { %s350_s21 = sand.u32 1, %s568_s6   ;;  %p770_p13 = scmp.ne.s32.totalorder %s764_s19, 0 }
 0x1d6   : > { %p771_p1 = scmp.ge.s32.totalorder %s580_s9, 2  ;;  %s351_s22 = scalar_lea.sflag [#allocation4], %s350_s21 }
 0x1d8   : > { %p448_p3 = pnand %p771_p1, %p770_p13 }
 0x1da   : > { %p449_p5 = pneg %p448_p3 }
 0x1dc   : > { %563 = dma.done.wait (%p449_p5), %s351_s22, 128  }
 0x1dd   : > { %565 = vsyncadd (%p449_p5), %s351_s22, 4294967168  ;;  %p14_p8 = scmp.ge.s32.totalorder %s619_s12, 4   ;;  %s772_s6 = smov %s572_s7 }
 0x1de   : > { %s773_s7 = smov %s576_s8  ;;  %s774_s8 = smov %s631_s15 }
 0x1df   : > { %s775_s9 = smov %s619_s12  ;;  %16 = sbr.rel (!%p14_p8) target bundleno = 5 (0x5), region = 69 }
 0x1e4   :  { %356 = vsyncpa [#allocation3], 1 }
 0x1e5   :  { %358 = vsyncpa [#allocation3 + $0x1], 1 }
 0x1e6   :  { %359 = vsyncpa [#allocation4], 1 }
 0x1e7   :  { %361 = vsyncpa [#allocation4 + $0x1], 1 }

</bundles_post_ra>
